<compile_context>
chip_gen: v7x
topology: tpu7x:2x2x1
jax: 0.10.0
libtpu: 0.0.40
codegen_flags: <defaults>
</compile_context>

<pallas_src>
import functools
import numpy as np

import jax
import jax.numpy as jnp
from jax.experimental import pallas as pl
from jax.experimental.pallas import tpu as pltpu

_VMEM_LIMIT = 48 * 1024 * 1024   # > v5e/v6e scoped defaults, < v7x physical 64 MiB


# ------------------------------ helpers ------------------------------

def _round_up(x, m):
    return (x + m - 1) // m * m


def _pick_tile(n, target, align):
    """Largest divisor of n that is <= target and a multiple of `align` (else n)."""
    if n <= target:
        return n
    t = (target // align) * align
    while t >= align:
        if n % t == 0:
            return t
        t -= align
    return n


def _erf_approx(x):
    # Abramowitz & Stegun 7.1.26 polynomial, |error| <= 1.5e-7 (effectively exact in f32).
    # TODO(synk): switch to an EUP-friendly erf (lax.erf) once its Mosaic lowering is guaranteed.
    a1, a2, a3, a4, a5 = 0.254829592, -0.284496736, 1.421413741, -1.453152027, 1.061405429
    pp = 0.3275911
    sgn = jnp.where(x >= 0.0, 1.0, -1.0)
    ax = jnp.abs(x)
    t = 1.0 / (1.0 + pp * ax)
    poly = ((((a5 * t + a4) * t + a3) * t + a2) * t + a1) * t
    return sgn * (1.0 - poly * jnp.exp(-ax * ax))


def _gelu_exact(x):
    return 0.5 * x * (1.0 + _erf_approx(x * 0.7071067811865476))


# ----------- Linear (+ fused LayerNorm prologue / epilogues) -----------

def _make_linear_kernel(nsplit, has_res, has_ln, activation, ln_eps):
    def kernel(*refs):
        idx = 0
        x_ref = refs[idx]; idx += 1
        w_ref = refs[idx]; idx += 1
        b_ref = refs[idx]; idx += 1
        g_ref = beta_ref = None
        if has_ln:
            g_ref = refs[idx]; idx += 1
            beta_ref = refs[idx]; idx += 1
        res_ref = None
        if has_res:
            res_ref = refs[idx]; idx += 1
        out_refs = refs[idx:idx + nsplit]

        x = x_ref[...]
        if has_ln:
            x32 = x.astype(jnp.float32)
            mu = jnp.mean(x32, axis=-1, keepdims=True)
            d = x32 - mu
            var = jnp.mean(d * d, axis=-1, keepdims=True)
            x32 = d * jax.lax.rsqrt(var + ln_eps)
            x32 = (x32 * g_ref[...].astype(jnp.float32)
                   + beta_ref[...].astype(jnp.float32))
            xb = x32.astype(jnp.bfloat16)
        else:
            xb = x.astype(jnp.bfloat16)

        y = jnp.dot(xb, w_ref[...].astype(jnp.bfloat16),
                    preferred_element_type=jnp.float32)
        y = y + b_ref[...].astype(jnp.float32)
        if has_res:
            y = y + res_ref[...].astype(jnp.float32)
        if activation == "gelu":
            y = _gelu_exact(y)
        n_each = y.shape[-1] // nsplit
        for s in range(nsplit):
            out_refs[s][...] = y[:, s * n_each:(s + 1) * n_each].astype(out_refs[s].dtype)

    return kernel


def linear(x, w, b, *, residual=None, ln=None, activation=None, nsplit=1,
           out_dtype=None, ln_eps=1e-5, tm_target=512):
    """y = LN?(x) @ w + b (+ residual) (+ GELU), optionally split column-wise.

    Single resident K block (the weight's index_map is grid-independent so it is DMA'd
    once and stays in VMEM); bf16 matmul operands, f32 epilogue.
    """
    M, K = x.shape
    Kw, Nf = w.shape
    assert Kw == K and Nf % nsplit == 0
    tm = _pick_tile(M, tm_target, 8)
    grid = (M // tm,)
    if out_dtype is None:
        out_dtype = residual.dtype if residual is not None else x.dtype

    in_specs = [
        pl.BlockSpec((tm, K), lambda i: (i, 0)),
        pl.BlockSpec((K, Nf), lambda i: (0, 0)),       # resident weight block
        pl.BlockSpec((1, Nf), lambda i: (0, 0)),
    ]
    inputs = [x, w, b.reshape(1, Nf)]
    if ln is not None:
        gamma, beta = ln
        in_specs += [pl.BlockSpec((1, K), lambda i: (0, 0)),
                     pl.BlockSpec((1, K), lambda i: (0, 0))]
        inputs += [gamma.reshape(1, K), beta.reshape(1, K)]
    if residual is not None:
        in_specs.append(pl.BlockSpec((tm, Nf), lambda i: (i, 0)))
        inputs.append(residual)

    n_each = Nf // nsplit
    out_shapes = tuple(jax.ShapeDtypeStruct((M, n_each), out_dtype) for _ in range(nsplit))
    out_specs = tuple(pl.BlockSpec((tm, n_each), lambda i: (i, 0)) for _ in range(nsplit))

    outs = pl.pallas_call(
        _make_linear_kernel(nsplit, residual is not None, ln is not None, activation, ln_eps),
        out_shape=out_shapes,
        grid=grid,
        in_specs=in_specs,
        out_specs=out_specs,
        compiler_params=pltpu.CompilerParams(
            dimension_semantics=("parallel",),
            vmem_limit_bytes=_VMEM_LIMIT),
    )(*inputs)
    return outs[0] if nsplit == 1 else outs


# ---------------------- Neighborhood attention ----------------------

def _nattn_kernel(q_ref, nbr_ref, bias_ref, k_hbm, v_hbm, o_ref,
                  kband_ref, vband_ref, acc_ref, sem,
                  *, num_heads, scale, k2, halo, band, seq_len):
    tq, C = q_ref.shape
    hd = C // num_heads
    b = pl.program_id(0)
    i = pl.program_id(1)

    start = jnp.clip(i * tq - halo, 0, seq_len - band)
    start = pl.multiple_of(start, 16)

    # Manual DMA of the halo'd k/v row band (contiguous rows) into VMEM scratch.
    cpk = pltpu.make_async_copy(k_hbm.at[b, pl.ds(start, band)], kband_ref, sem.at[0])
    cpv = pltpu.make_async_copy(v_hbm.at[b, pl.ds(start, band)], vband_ref, sem.at[1])
    cpk.start()
    cpv.start()

    q = q_ref[...].astype(jnp.float32) * scale                    # (tq, C)
    bias = bias_ref[...]                                          # (tq, pad) f32

    iota_b = jax.lax.broadcasted_iota(jnp.int32, (tq, band), 1)

    # (h, C) head-expansion and (C, h) per-head-reduction 0/1 matrices (built from iotas).
    e_row = jax.lax.broadcasted_iota(jnp.int32, (num_heads, C), 0)
    e_col = jax.lax.broadcasted_iota(jnp.int32, (num_heads, C), 1)
    expand = (e_col // hd == e_row).astype(jnp.float32)           # (h, C)
    r_row = jax.lax.broadcasted_iota(jnp.int32, (C, num_heads), 0)
    r_col = jax.lax.broadcasted_iota(jnp.int32, (C, num_heads), 1)
    reduce_m = (r_row // hd == r_col).astype(jnp.float32)         # (C, h)

    cpk.wait()
    kb = kband_ref[...].astype(jnp.bfloat16)                      # (band, C)

    # Pass 1: per-tap scores via one-hot band gather (MXU).
    # TODO(synk): on v5e (dilation=1) the gather could use pltpu.roll on the band instead
    # of one-hot matmuls to keep the MXU free for the score/PV math.
    scores = []
    for kk in range(k2):
        oh = ((nbr_ref[:, kk:kk + 1] - start) == iota_b).astype(jnp.bfloat16)   # (tq, band)
        kg = jnp.dot(oh, kb, preferred_element_type=jnp.float32)                # (tq, C)
        s = jnp.dot(q * kg, reduce_m, preferred_element_type=jnp.float32)       # (tq, h)
        scores.append(s + bias[:, kk * num_heads:(kk + 1) * num_heads].astype(jnp.float32))

    # Exact (two-pass) softmax over the K2 taps per head -- no loop-carried m/l chain.
    m = scores[0]
    for s in scores[1:]:
        m = jnp.maximum(m, s)
    probs = [jnp.exp(s - m) for s in scores]
    l = probs[0]
    for p in probs[1:]:
        l = l + p
    inv_l = 1.0 / l                                               # (tq, h)

    cpv.wait()
    vb = vband_ref[...].astype(jnp.bfloat16)                      # (band, C)

    # Pass 2: probability-weighted combine of the gathered V taps (accumulate in VMEM).
    acc_ref[...] = jnp.zeros_like(acc_ref)
    for kk in range(k2):
        oh = ((nbr_ref[:, kk:kk + 1] - start) == iota_b).astype(jnp.bfloat16)
        vg = jnp.dot(oh, vb, preferred_element_type=jnp.float32)                 # (tq, C)
        pw = probs[kk] * inv_l                                                   # (tq, h)
        acc_ref[...] += jnp.dot(pw, expand, preferred_element_type=jnp.float32) * vg

    o_ref[...] = acc_ref[...].astype(o_ref.dtype)


def neighborhood_attention(q, k, v, nbr_idx, bias2d, *, num_heads, scale, k2, halo,
                           tq_target=64):
    """q/k/v: (B, N, C) channels head-major; nbr_idx: (N, >=K2) int32 (lane-padded);
    bias2d: (N, >=K2*h) f32 (lane-padded).  Output: (B, N, C), heads folded into channels.
    """
    B, N, C = q.shape
    tq = _pick_tile(N, tq_target, 8)

    # Band of k/v rows that covers every neighbor of a contiguous tq-row query tile.
    # Keep starts 16-aligned (bf16 tile rows) for clean DMA; otherwise fall back to
    # the full sequence (start is then always 0).
    align = 16
    halo_a = _round_up(halo, align)
    band = tq + 2 * halo_a
    if band >= N or (N % align) or (tq % align):
        band = N
        halo_a = 0

    grid = (B, N // tq)
    kernel = functools.partial(_nattn_kernel, num_heads=num_heads, scale=scale,
                               k2=k2, halo=halo_a, band=band, seq_len=N)
    nbr_pad = nbr_idx.shape[1]
    bias_pad = bias2d.shape[1]
    return pl.pallas_call(
        kernel,
        out_shape=jax.ShapeDtypeStruct((B, N, C), q.dtype),
        grid=grid,
        in_specs=[
            pl.BlockSpec((None, tq, C), lambda b, i: (b, i, 0)),
            pl.BlockSpec((tq, nbr_pad), lambda b, i: (i, 0)),
            pl.BlockSpec((tq, bias_pad), lambda b, i: (i, 0)),
            pl.BlockSpec(memory_space=pl.ANY),      # k stays in HBM, banded via manual DMA
            pl.BlockSpec(memory_space=pl.ANY),      # v stays in HBM
        ],
        out_specs=pl.BlockSpec((None, tq, C), lambda b, i: (b, i, 0)),
        scratch_shapes=[
            pltpu.VMEM((band, C), k.dtype),
            pltpu.VMEM((band, C), v.dtype),
            pltpu.VMEM((tq, C), jnp.float32),
            pltpu.SemaphoreType.DMA((2,)),
        ],
        compiler_params=pltpu.CompilerParams(
            dimension_semantics=("parallel", "parallel"),
            vmem_limit_bytes=_VMEM_LIMIT),
    )(q, nbr_idx, bias2d, k, v)


# ----------------------- Conv downsampler (fused) -----------------------

def _conv_down_kernel(p00_ref, p01_ref, p10_ref, p11_ref, w_ref, g_ref, b_ref, o_ref,
                      *, Ho, Wo, eps):
    C = p00_ref.shape[-1]
    C2 = w_ref.shape[-1]
    phase_refs = ((p00_ref, p01_ref), (p10_ref, p11_ref))
    acc = jnp.zeros((Ho * Wo, C2), jnp.float32)
    # 9 accumulated tap matmuls; each tap is a contiguous static slice of one stride-2
    # phase (phases pre-split in the wrapper -> no in-kernel stride-2 relayout).
    for kh in range(3):
        for kw in range(3):
            pref = phase_refs[kh % 2][kw % 2]
            patch = pref[kh // 2:kh // 2 + Ho, kw // 2:kw // 2 + Wo, :]   # (Ho, Wo, C)
            p2 = patch.reshape(Ho * Wo, C).astype(jnp.bfloat16)
            acc = acc + jnp.dot(p2, w_ref[kh * 3 + kw].astype(jnp.bfloat16),
                                preferred_element_type=jnp.float32)
    # fused LayerNorm(2C)
    mu = jnp.mean(acc, axis=-1, keepdims=True)
    d = acc - mu
    var = jnp.mean(d * d, axis=-1, keepdims=True)
    y = d * jax.lax.rsqrt(var + eps)
    y = y * g_ref[...].astype(jnp.float32) + b_ref[...].astype(jnp.float32)
    o_ref[...] = y.astype(o_ref.dtype)


def conv_downsampler(x, w9, norm_g, norm_b, eps=1e-5):
    """3x3 stride-2 pad-1 conv (bias=False) + LayerNorm(2C), fused per batch image."""
    # TODO(synk): for stage-0-sized images on v7x, tile over output rows (halo'd window)
    # instead of one whole image per grid step.
    B, H, W, C = x.shape
    Ho = (H + 1) // 2
    Wo = (W + 1) // 2
    Hp, Wp = 2 * Ho + 2, 2 * Wo + 2
    xp = jnp.pad(x, ((0, 0), (1, Hp - H - 1), (1, Wp - W - 1), (0, 0)))
    # 4 stride-2 phases, each (B, Ho+1, Wo+1, C); tap (kh,kw) reads phase (kh%2, kw%2).
    phases = [xp[:, ph::2, pw::2, :] for ph in (0, 1) for pw in (0, 1)]
    C2 = w9.shape[-1]
    phase_spec = pl.BlockSpec((None, Ho + 1, Wo + 1, C), lambda b: (b, 0, 0, 0))
    out = pl.pallas_call(
        functools.partial(_conv_down_kernel, Ho=Ho, Wo=Wo, eps=eps),
        out_shape=jax.ShapeDtypeStruct((B, Ho * Wo, C2), x.dtype),
        grid=(B,),
        in_specs=[phase_spec, phase_spec, phase_spec, phase_spec,
                  pl.BlockSpec((9, C, C2), lambda b: (0, 0, 0)),
                  pl.BlockSpec((1, C2), lambda b: (0, 0)),
                  pl.BlockSpec((1, C2), lambda b: (0, 0))],
        out_specs=pl.BlockSpec((None, Ho * Wo, C2), lambda b: (b, 0, 0)),
        compiler_params=pltpu.CompilerParams(
            dimension_semantics=("parallel",),
            vmem_limit_bytes=_VMEM_LIMIT),
    )(*phases, w9, norm_g.reshape(1, C2), norm_b.reshape(1, C2))
    return out.reshape(B, Ho, Wo, C2)


# ------------------------ NATTEN neighborhood indices ------------------------
# Matches natten's get_window_start / get_pb_start edge-clamping semantics.

def _window_start(i, L, k, nh, d):
    if d <= 1:
        return max(i - nh, 0) + ((L - i - nh - 1) if (i + nh >= L) else 0)
    ni = i - nh * d
    if ni < 0:
        return i % d
    if i + nh * d >= L:
        imodd = i % d
        a = (L // d) * d
        b = L - a
        if imodd < b:
            return L - b + imodd - 2 * nh * d
        return a + imodd - k * d
    return ni


def _pb_start(i, L, k, nh, d):
    if d <= 1:
        return nh + ((nh - i) if (i < nh) else 0) + ((L - i - 1 - nh) if (i + nh >= L) else 0)
    if i - nh * d < 0:
        return k - 1 - (i // d)
    if i + nh * d >= L:
        return (L - i - 1) // d
    return nh


def build_natten_indices(H, W, k, dilation):
    # TODO(synk): the natten padding path for H or W < kernel_size * dilation is not handled.
    assert H >= k * dilation and W >= k * dilation
    nh = k // 2
    d = dilation
    nbr = np.zeros((H, W, k * k), np.int32)
    rpb = np.zeros((H, W, k * k), np.int32)
    for i in range(H):
        ni, pi = _window_start(i, H, k, nh, d), _pb_start(i, H, k, nh, d)
        for j in range(W):
            nj, pj = _window_start(j, W, k, nh, d), _pb_start(j, W, k, nh, d)
            for ki in range(k):
                for kj in range(k):
                    nbr[i, j, ki * k + kj] = (ni + ki * d) * W + (nj + kj * d)
                    rpb[i, j, ki * k + kj] = (pi + ki) * (2 * k - 1) + (pj + kj)
    return nbr.reshape(H * W, k * k), rpb.reshape(H * W, k * k)


# ------------------------------ Module forward ------------------------------

def nat_layer_forward(x, p, *, num_heads, kernel_size, nbr_idx, halo):
    B, H, W, C = x.shape
    N = H * W
    hd = C // num_heads
    scale = hd ** -0.5
    k2 = kernel_size * kernel_size

    x2 = x.reshape(B * N, C)
    # fused norm1 + qkv matmul with in-kernel 3-way split (bf16 q/k/v outputs)
    q, k, v = linear(x2, p['qkv_w'], p['qkv_b'], ln=(p['norm1_g'], p['norm1_b']),
                     nsplit=3, out_dtype=jnp.bfloat16)

    attn = neighborhood_attention(
        q.reshape(B, N, C), k.reshape(B, N, C), v.reshape(B, N, C),
        nbr_idx, p['bias2d'], num_heads=num_heads, scale=scale, k2=k2, halo=halo)

    # proj with fused residual add (drop_path / dropout identity, layer_scale None)
    xr = linear(attn.reshape(B * N, C), p['proj_w'], p['proj_b'],
                residual=x2, out_dtype=jnp.float32)
    # fused norm2 + fc1 + bias + GELU (bf16 hidden activation)
    h1 = linear(xr, p['fc1_w'], p['fc1_b'], ln=(p['norm2_g'], p['norm2_b']),
                activation='gelu', out_dtype=jnp.bfloat16)
    out = linear(h1, p['fc2_w'], p['fc2_b'], residual=xr, out_dtype=jnp.float32)
    return out.reshape(B, H, W, C)


def nat_block_forward(x, layer_params, down_params, *, num_heads, kernel_size,
                      nbr_idx, halo):
    for p in layer_params:
        x = nat_layer_forward(x, p, num_heads=num_heads, kernel_size=kernel_size,
                              nbr_idx=nbr_idx, halo=halo)
    x_down = conv_downsampler(x, down_params['conv_w9'], down_params['norm_g'],
                              down_params['norm_b'])
    return x_down, x   # matches PyTorch: (self.downsample(x), x)


# ----------------------------- Parameters -----------------------------

def init_params(key, dim, depth, num_heads, kernel_size, mlp_ratio):
    hidden = int(dim * mlp_ratio)
    layers = []
    for _ in range(depth):
        keys = jax.random.split(key, 6)
        key = keys[-1]
        layers.append({
            'norm1_g': jnp.ones((dim,), jnp.float32),
            'norm1_b': jnp.zeros((dim,), jnp.float32),
            'qkv_w': 0.02 * jax.random.normal(keys[0], (dim, 3 * dim), jnp.float32),
            'qkv_b': jnp.zeros((3 * dim,), jnp.float32),
            'rpb': 0.02 * jax.random.normal(
                keys[1], (num_heads, 2 * kernel_size - 1, 2 * kernel_size - 1), jnp.float32),
            'proj_w': 0.02 * jax.random.normal(keys[2], (dim, dim), jnp.float32),
            'proj_b': jnp.zeros((dim,), jnp.float32),
            'norm2_g': jnp.ones((dim,), jnp.float32),
            'norm2_b': jnp.zeros((dim,), jnp.float32),
            'fc1_w': 0.02 * jax.random.normal(keys[3], (dim, hidden), jnp.float32),
            'fc1_b': jnp.zeros((hidden,), jnp.float32),
            'fc2_w': 0.02 * jax.random.normal(keys[4], (hidden, dim), jnp.float32),
            'fc2_b': jnp.zeros((dim,), jnp.float32),
        })
    kd = jax.random.split(key, 1)[0]
    down = {
        'conv_w': 0.02 * jax.random.normal(kd, (2 * dim, dim, 3, 3), jnp.float32),
        'norm_g': jnp.ones((2 * dim,), jnp.float32),
        'norm_b': jnp.zeros((2 * dim,), jnp.float32),
    }
    return layers, down


def prepare_params(layer_params, down_params, rpb_idx, num_heads, dim):
    """One-time precompute: bf16 weights, lane-padded rpb bias table, conv weight reorder."""
    N, K2 = rpb_idx.shape
    pad_b = _round_up(K2 * num_heads, 128)
    prepped = []
    for p in layer_params:
        q = dict(p)
        for name in ('qkv_w', 'proj_w', 'fc1_w', 'fc2_w'):
            q[name] = p[name].astype(jnp.bfloat16)
        rpb_flat = p['rpb'].reshape(num_heads, -1)
        bias = jnp.take(rpb_flat, rpb_idx.reshape(-1), axis=1).reshape(num_heads, N, K2)
        bias2d = jnp.transpose(bias, (1, 2, 0)).reshape(N, K2 * num_heads)
        q['bias2d'] = jnp.pad(bias2d, ((0, 0), (0, pad_b - K2 * num_heads)))
        prepped.append(q)
    d = dict(down_params)
    # (2C, C, 3, 3) -> (kh, kw, C_in, C_out) -> (9, C, 2C); tap index = kh*3 + kw
    d['conv_w9'] = jnp.transpose(down_params['conv_w'], (2, 3, 1, 0)
                                 ).reshape(9, dim, 2 * dim).astype(jnp.bfloat16)
    return prepped, d


# ---------------------------------- Main ----------------------------------

if __name__ == "__main__":
    B, H, W, dim = 2, 8, 8, 32
    depth, num_heads, kernel_size = 2, 2, 3     # dilations=None -> dilation=1 per layer
    mlp_ratio = 4.0

    key = jax.random.PRNGKey(0)
    kx, kp = jax.random.split(key)
    x = jax.random.normal(kx, (B, H, W, dim), jnp.float32)   # NHWC input

    layers, down = init_params(kp, dim, depth, num_heads, kernel_size, mlp_ratio)
    nbr_idx_np, rpb_idx_np = build_natten_indices(H, W, kernel_size, dilation=1)
    N = H * W

    # Exact halo (max |neighbor - query| over the flattened sequence) for band sizing,
    # and lane-dense padding of the neighbor-index table.
    halo = int(np.max(np.abs(nbr_idx_np.astype(np.int64) - np.arange(N)[:, None])))
    nbr_pad = _round_up(nbr_idx_np.shape[1], 128)
    nbr_padded = np.zeros((N, nbr_pad), np.int32)
    nbr_padded[:, :nbr_idx_np.shape[1]] = nbr_idx_np
    nbr_idx = jnp.asarray(nbr_padded)
    rpb_idx = jnp.asarray(rpb_idx_np)

    layers_p, down_p = prepare_params(layers, down, rpb_idx, num_heads, dim)

    y_down, y = nat_block_forward(x, layers_p, down_p, num_heads=num_heads,
                                  kernel_size=kernel_size, nbr_idx=nbr_idx, halo=halo)
    jax.block_until_ready((y_down, y))
    assert y.shape == (B, H, W, dim)
    assert y_down.shape == (B, H // 2, W // 2, 2 * dim)
    print("KERNEL_OK")
</pallas_src>

<mosaic_0001>
module attributes {stable_mosaic.version = 11 : i64} {
  func.func @kernel(%arg0: i32, %arg1: memref<128x32xf32, #tpu.memory_space<vmem>>, %arg2: memref<32x96xbf16, #tpu.memory_space<vmem>>, %arg3: memref<1x96xf32, #tpu.memory_space<vmem>>, %arg4: memref<1x32xf32, #tpu.memory_space<vmem>>, %arg5: memref<1x32xf32, #tpu.memory_space<vmem>>, %arg6: memref<128x32xbf16, #tpu.memory_space<vmem>>, %arg7: memref<128x32xbf16, #tpu.memory_space<vmem>>, %arg8: memref<128x32xbf16, #tpu.memory_space<vmem>>) attributes {dimension_semantics = [#tpu.dimension_semantics<parallel>], iteration_bounds = array<i64: 1>, scalar_prefetch = 0 : i64, scratch_operands = 0 : i64, tpu.core_type = #tpu.core_type<tc>, window_params = [{transform_indices = @transform_0, window_bounds = array<i64: 128, 32>}, {pipeline_mode = #tpu.pipeline_mode<synchronous>, transform_indices = @transform_1, window_bounds = array<i64: 32, 96>}, {pipeline_mode = #tpu.pipeline_mode<synchronous>, transform_indices = @transform_2, window_bounds = array<i64: 1, 96>}, {pipeline_mode = #tpu.pipeline_mode<synchronous>, transform_indices = @transform_3, window_bounds = array<i64: 1, 32>}, {pipeline_mode = #tpu.pipeline_mode<synchronous>, transform_indices = @transform_4, window_bounds = array<i64: 1, 32>}, {transform_indices = @transform_5, window_bounds = array<i64: 128, 32>}, {transform_indices = @transform_6, window_bounds = array<i64: 128, 32>}, {transform_indices = @transform_7, window_bounds = array<i64: 128, 32>}]} {
    %c0 = arith.constant 0 : index
    %c0_0 = arith.constant 0 : index
    %0 = vector.load %arg1[%c0, %c0_0] : memref<128x32xf32, #tpu.memory_space<vmem>>, vector<128x32xf32>
    %cst = arith.constant dense<0.000000e+00> : vector<128xf32>
    %1 = vector.multi_reduction <add>, %0, %cst [1] : vector<128x32xf32> to vector<128xf32>
    %2 = vector.shape_cast %1 : vector<128xf32> to vector<128x1xf32>
    %cst_1 = arith.constant 3.200000e+01 : f32
    %3 = vector.broadcast %cst_1 : f32 to vector<128x1xf32>
    %4 = arith.divf %2, %3 : vector<128x1xf32>
    %5 = vector.broadcast %4 : vector<128x1xf32> to vector<128x32xf32>
    %6 = arith.subf %0, %5 : vector<128x32xf32>
    %7 = arith.mulf %6, %6 : vector<128x32xf32>
    %cst_2 = arith.constant dense<0.000000e+00> : vector<128xf32>
    %8 = vector.multi_reduction <add>, %7, %cst_2 [1] : vector<128x32xf32> to vector<128xf32>
    %9 = vector.shape_cast %8 : vector<128xf32> to vector<128x1xf32>
    %cst_3 = arith.constant 3.200000e+01 : f32
    %10 = vector.broadcast %cst_3 : f32 to vector<128x1xf32>
    %11 = arith.divf %9, %10 : vector<128x1xf32>
    %cst_4 = arith.constant 9.99999974E-6 : f32
    %12 = vector.broadcast %cst_4 : f32 to vector<128x1xf32>
    %13 = arith.addf %11, %12 : vector<128x1xf32>
    %14 = math.rsqrt %13 : vector<128x1xf32>
    %15 = vector.broadcast %14 : vector<128x1xf32> to vector<128x32xf32>
    %16 = arith.mulf %6, %15 : vector<128x32xf32>
    %c0_5 = arith.constant 0 : index
    %c0_6 = arith.constant 0 : index
    %17 = vector.load %arg4[%c0_5, %c0_6] : memref<1x32xf32, #tpu.memory_space<vmem>>, vector<1x32xf32>
    %18 = vector.broadcast %17 : vector<1x32xf32> to vector<128x32xf32>
    %19 = arith.mulf %16, %18 : vector<128x32xf32>
    %c0_7 = arith.constant 0 : index
    %c0_8 = arith.constant 0 : index
    %20 = vector.load %arg5[%c0_7, %c0_8] : memref<1x32xf32, #tpu.memory_space<vmem>>, vector<1x32xf32>
    %21 = vector.broadcast %20 : vector<1x32xf32> to vector<128x32xf32>
    %22 = arith.addf %19, %21 : vector<128x32xf32>
    %23 = arith.truncf %22 : vector<128x32xf32> to vector<128x32xbf16>
    %c0_9 = arith.constant 0 : index
    %c0_10 = arith.constant 0 : index
    %24 = vector.load %arg2[%c0_9, %c0_10] : memref<32x96xbf16, #tpu.memory_space<vmem>>, vector<32x96xbf16>
    %cst_11 = arith.constant dense<0.000000e+00> : vector<128x96xf32>
    %25 = tpu.matmul %23, %24, %cst_11 {dimension_numbers = #tpu.dot_dimension_numbers<[1], [0], [0], [1], [0, 0, 1, 1], [], []>} : vector<128x32xbf16>, vector<32x96xbf16>, vector<128x96xf32> -> vector<128x96xf32>
    %c0_12 = arith.constant 0 : index
    %c0_13 = arith.constant 0 : index
    %26 = vector.load %arg3[%c0_12, %c0_13] : memref<1x96xf32, #tpu.memory_space<vmem>>, vector<1x96xf32>
    %27 = vector.broadcast %26 : vector<1x96xf32> to vector<128x96xf32>
    %28 = arith.addf %25, %27 : vector<128x96xf32>
    %29 = vector.extract_strided_slice %28 {offsets = [0, 0], sizes = [128, 32], strides = [1, 1]} : vector<128x96xf32> to vector<128x32xf32>
    %30 = arith.truncf %29 : vector<128x32xf32> to vector<128x32xbf16>
    %c0_14 = arith.constant 0 : index
    %c0_15 = arith.constant 0 : index
    %31 = vector.load %arg6[%c0_14, %c0_15] : memref<128x32xbf16, #tpu.memory_space<vmem>>, vector<128x32xbf16>
    tpu.vector_store %arg6[%c0_14, %c0_15], %30 {strides = array<i32>} : memref<128x32xbf16, #tpu.memory_space<vmem>>, vector<128x32xbf16>,
    %32 = vector.extract_strided_slice %28 {offsets = [0, 32], sizes = [128, 32], strides = [1, 1]} : vector<128x96xf32> to vector<128x32xf32>
    %33 = arith.truncf %32 : vector<128x32xf32> to vector<128x32xbf16>
    %c0_16 = arith.constant 0 : index
    %c0_17 = arith.constant 0 : index
    %34 = vector.load %arg7[%c0_16, %c0_17] : memref<128x32xbf16, #tpu.memory_space<vmem>>, vector<128x32xbf16>
    tpu.vector_store %arg7[%c0_16, %c0_17], %33 {strides = array<i32>} : memref<128x32xbf16, #tpu.memory_space<vmem>>, vector<128x32xbf16>,
    %35 = vector.extract_strided_slice %28 {offsets = [0, 64], sizes = [128, 32], strides = [1, 1]} : vector<128x96xf32> to vector<128x32xf32>
    %36 = arith.truncf %35 : vector<128x32xf32> to vector<128x32xbf16>
    %c0_18 = arith.constant 0 : index
    %c0_19 = arith.constant 0 : index
    %37 = vector.load %arg8[%c0_18, %c0_19] : memref<128x32xbf16, #tpu.memory_space<vmem>>, vector<128x32xbf16>
    tpu.vector_store %arg8[%c0_18, %c0_19], %36 {strides = array<i32>} : memref<128x32xbf16, #tpu.memory_space<vmem>>, vector<128x32xbf16>,
    return
  }
  func.func @transform_0(%arg0: i32) -> (i32, i32) {
    %c0_i32 = arith.constant 0 : i32
    %c0_i32_0 = arith.constant 0 : i32
    return %arg0, %c0_i32 : i32, i32
  }
  func.func @transform_1(%arg0: i32) -> (i32, i32) {
    %c0_i32 = arith.constant 0 : i32
    %c0_i32_0 = arith.constant 0 : i32
    %c0_i32_1 = arith.constant 0 : i32
    return %c0_i32, %c0_i32_0 : i32, i32
  }
  func.func @transform_2(%arg0: i32) -> (i32, i32) {
    %c0_i32 = arith.constant 0 : i32
    %c0_i32_0 = arith.constant 0 : i32
    %c0_i32_1 = arith.constant 0 : i32
    return %c0_i32, %c0_i32_0 : i32, i32
  }
  func.func @transform_3(%arg0: i32) -> (i32, i32) {
    %c0_i32 = arith.constant 0 : i32
    %c0_i32_0 = arith.constant 0 : i32
    %c0_i32_1 = arith.constant 0 : i32
    return %c0_i32, %c0_i32_0 : i32, i32
  }
  func.func @transform_4(%arg0: i32) -> (i32, i32) {
    %c0_i32 = arith.constant 0 : i32
    %c0_i32_0 = arith.constant 0 : i32
    %c0_i32_1 = arith.constant 0 : i32
    return %c0_i32, %c0_i32_0 : i32, i32
  }
  func.func @transform_5(%arg0: i32) -> (i32, i32) {
    %c0_i32 = arith.constant 0 : i32
    %c0_i32_0 = arith.constant 0 : i32
    return %arg0, %c0_i32 : i32, i32
  }
  func.func @transform_6(%arg0: i32) -> (i32, i32) {
    %c0_i32 = arith.constant 0 : i32
    %c0_i32_0 = arith.constant 0 : i32
    return %arg0, %c0_i32 : i32, i32
  }
  func.func @transform_7(%arg0: i32) -> (i32, i32) {
    %c0_i32 = arith.constant 0 : i32
    %c0_i32_0 = arith.constant 0 : i32
    return %arg0, %c0_i32 : i32, i32
  }
}

</mosaic_0001>

<bundles_post_ra>
// kernel: tpu_custom_call.1
= control target key start
LH: loop header
LB: loop body
LE: loop exit
PB: predicated region body
PF: predicated region fallthrough
CT: control target
= control target key end

     0   :  { %vm40_vm0 = vcmask 261120   ;;  %vm512_vm1 = vcmask 257024   ;;  %s784_s17 = smov 96   ;;  %s785_s9 = smov 64   ;;  %s1332_s0 = inlined_call_operand.vmem [shape: f32[128,32], index: 0, kind: input, shape index: {}]   ;;  %s1333_s1 = inlined_call_operand.vmem [shape: bf16[32,96], index: 1, kind: input, shape index: {}]   ;;  %s1334_s3 = inlined_call_operand.vmem [shape: f32[1,32], index: 3, kind: input, shape index: {}]   ;;  %s1335_s4 = inlined_call_operand.vmem [shape: f32[1,32], index: 4, kind: input, shape index: {}]   ;;  %s1336_s2 = inlined_call_operand.vmem [shape: f32[1,96], index: 2, kind: input, shape index: {}]   ;;  %s1337_s5 = inlined_call_operand.vmem [shape: bf16[128,32], index: 5, kind: output, shape index: {0}]   ;;  %s1338_s6 = inlined_call_operand.vmem [shape: bf16[128,32], index: 6, kind: output, shape index: {1}]   ;;  %s1339_s7 = inlined_call_operand.vmem [shape: bf16[128,32], index: 7, kind: output, shape index: {2}]  }
   0x1   :  { %v24_v0 = vld [vmem:[%s1332_s0] sm:$0xff]  ;;  %v25_v2 = vld [vmem:[%s1332_s0 + $0x8] sm:$0xff]  ;;  %v26_v8 = vld [vmem:[%s1332_s0 + $0x10] sm:$0xff] }
   0x2   :  { %v32_v1 = vld [vmem:[%s1332_s0 + $0x40] sm:$0xff]  ;;  %v41_v3 = vsel %vm40_vm0, %v24_v0, 0.0  ;;  %v33_v5 = vld [vmem:[%s1332_s0 + $0x48] sm:$0xff]  ;;  %v44_v6 = vsel %vm40_vm0, %v25_v2, 0.0  ;;  %v27_v9 = vld [vmem:[%s1332_s0 + $0x18] sm:$0xff]  ;;  %v47_v10 = vsel %vm40_vm0, %v26_v8, 0.0 }
   0x3   :  { %v65_v4 = vsel %vm40_vm0, %v32_v1, 0.0  ;;  %42 = vadd.xlane.f32.xlu0 %v41_v3  ;;  %v68_v7 = vsel %vm40_vm0, %v33_v5, 0.0  ;;  %v50_v11 = vsel %vm40_vm0, %v27_v9, 0.0  ;;  %v853_v12 = vld [vmem:[%s1332_s0 + $0x50] sm:$0xff]  ;;  %v858_v13 = vld [vmem:[%s1332_s0 + $0x58] sm:$0xff]  ;;  %v867_v16 = vld [vmem:[%s1332_s0 + $0x20] sm:$0xff] }
   0x4   :  { %66 = vadd.xlane.f32.xlu1 %v65_v4  ;;  %v71_v14 = vsel %vm40_vm0, %v853_v12, 0.0  ;;  %v74_v15 = vsel %vm40_vm0, %v858_v13, 0.0  ;;  %v872_v17 = vld [vmem:[%s1332_s0 + $0x28] sm:$0xff]  ;;  %v53_v18 = vsel %vm40_vm0, %v867_v16, 0.0  ;;  %v881_v20 = vld [vmem:[%s1332_s0 + $0x60] sm:$0xff]  ;;  %v895_v24 = vld [vmem:[%s1332_s0 + $0x30] sm:$0xff] }
   0x5   :  { %v56_v19 = vsel %vm40_vm0, %v872_v17, 0.0  ;;  %v886_v21 = vld [vmem:[%s1332_s0 + $0x68] sm:$0xff]  ;;  %v77_v22 = vsel %vm40_vm0, %v881_v20, 0.0  ;;  %v900_v25 = vld [vmem:[%s1332_s0 + $0x38] sm:$0xff]  ;;  %v59_v26 = vsel %vm40_vm0, %v895_v24, 0.0  ;;  %v909_v28 = vld [vmem:[%s1332_s0 + $0x70] sm:$0xff] }
   0x6   :  { %v80_v23 = vsel %vm40_vm0, %v886_v21, 0.0  ;;  %v62_v27 = vsel %vm40_vm0, %v900_v25, 0.0  ;;  %v914_v29 = vld [vmem:[%s1332_s0 + $0x78] sm:$0xff]  ;;  %v83_v30 = vsel %vm40_vm0, %v909_v28, 0.0 }
   0x7   :  { %45 = vadd.xlane.f32.xlu0 %v44_v6  ;;  %v86_v31 = vsel %vm40_vm0, %v914_v29, 0.0 }
   0x8   :  { %69 = vadd.xlane.f32.xlu1 %v68_v7 }
   0xb   :  { %48 = vadd.xlane.f32.xlu0 %v47_v10 }
   0xc   :  { %51 = vadd.xlane.f32.xlu1 %v50_v11 }
   0xf   :  { %72 = vadd.xlane.f32.xlu0 %v71_v14 }
  0x10   :  { %75 = vadd.xlane.f32.xlu1 %v74_v15 }
  0x13   :  { %54 = vadd.xlane.f32.xlu0 %v53_v18 }
  0x14   :  { %57 = vadd.xlane.f32.xlu1 %v56_v19 }
  0x17   :  { %78 = vadd.xlane.f32.xlu0 %v77_v22 }
  0x18   :  { %81 = vadd.xlane.f32.xlu1 %v80_v23 }
  0x1b   :  { %60 = vadd.xlane.f32.xlu0 %v59_v26 }
  0x1c   :  { %63 = vadd.xlane.f32.xlu1 %v62_v27 }
  0x1f   :  { %84 = vadd.xlane.f32.xlu0 %v83_v30 }
  0x20   :  { %87 = vadd.xlane.f32.xlu1 %v86_v31 }
  0x90   :  { %v43_v32 = vpop.xlane.xlu0 %42 }
  0x91   :  { %v67_v33 = vpop.xlane.xlu1 %66  ;;  %v90_v34 = vmul.f32 0.03125, %v43_v32 }
  0x92   :  { %v98_v35 = vmul.f32 0.03125, %v67_v33 }
  0x93   :  { %v920_v36 = vsub.f32 %v24_v0, %v90_v34 }
  0x94   :  { %v922_v37 = vsub.f32 %v32_v1, %v98_v35  ;;  %v46_v38 = vpop.xlane.xlu0 %45 }
  0x95   :  { %v70_v39 = vpop.xlane.xlu1 %69  ;;  %v91_v40 = vmul.f32 0.03125, %v46_v38  ;;  %v122_v42 = vmul.f32 %v920_v36, %v920_v36 }
  0x96   :  { %v99_v41 = vmul.f32 0.03125, %v70_v39  ;;  %v130_v43 = vmul.f32 %v922_v37, %v922_v37 }
  0x97   :  { %v928_v44 = vsub.f32 %v25_v2, %v91_v40  ;;  %v138_v46 = vsel %vm40_vm0, %v122_v42, 0.0 }
  0x98   :  { %v930_v45 = vsub.f32 %v33_v5, %v99_v41  ;;  %139 = vadd.xlane.f32.xlu0 %v138_v46  ;;  %v49_v47 = vpop.xlane.xlu0 %48  ;;  %v162_v49 = vsel %vm40_vm0, %v130_v43, 0.0 }
  0x99   :  { %v52_v48 = vpop.xlane.xlu1 %51  ;;  %v92_v50 = vmul.f32 0.03125, %v49_v47  ;;  %v123_v52 = vmul.f32 %v928_v44, %v928_v44 }
  0x9a   :  { %v93_v51 = vmul.f32 0.03125, %v52_v48  ;;  %v131_v53 = vmul.f32 %v930_v45, %v930_v45 }
  0x9b   :  { %v938_v54 = vsub.f32 %v26_v8, %v92_v50  ;;  %v141_v56 = vsel %vm40_vm0, %v123_v52, 0.0 }
  0x9c   :  { %v940_v55 = vsub.f32 %v27_v9, %v93_v51  ;;  %163 = vadd.xlane.f32.xlu0 %v162_v49  ;;  %142 = vadd.xlane.f32.xlu1 %v141_v56  ;;  %v73_v57 = vpop.xlane.xlu0 %72  ;;  %v165_v59 = vsel %vm40_vm0, %v131_v53, 0.0  ;;  %v751_v53 = vld [vmem:[%s1333_s1 + $0x8] sm:$0xff]  }
  0x9d   :  { %v76_v58 = vpop.xlane.xlu1 %75  ;;  %v100_v60 = vmul.f32 0.03125, %v73_v57  ;;  %v124_v62 = vmul.f32 %v938_v54, %v938_v54 }
  0x9e   :  { %v101_v61 = vmul.f32 0.03125, %v76_v58  ;;  %v125_v63 = vmul.f32 %v940_v55, %v940_v55 }
  0x9f   :  { %v949_v0 = vsub.f32 %v853_v12, %v100_v60  ;;  %v144_v2 = vsel %vm40_vm0, %v124_v62, 0.0 }
  0xa0   :  { %v952_v1 = vsub.f32 %v858_v13, %v101_v61  ;;  %166 = vadd.xlane.f32.xlu1 %v165_v59  ;;  %145 = vadd.xlane.f32.xlu0 %v144_v2  ;;  %v55_v3 = vpop.xlane.xlu0 %54  ;;  %v147_v5 = vsel %vm40_vm0, %v125_v63, 0.0 }
  0xa1   :  { %v58_v4 = vpop.xlane.xlu1 %57  ;;  %v94_v6 = vmul.f32 0.03125, %v55_v3  ;;  %v132_v8 = vmul.f32 %v949_v0, %v949_v0 }
  0xa2   :  { %v95_v7 = vmul.f32 0.03125, %v58_v4  ;;  %v133_v9 = vmul.f32 %v952_v1, %v952_v1 }
  0xa3   :  { %v961_v10 = vsub.f32 %v867_v16, %v94_v6  ;;  %v168_v12 = vsel %vm40_vm0, %v132_v8, 0.0 }
  0xa4   :  { %v964_v11 = vsub.f32 %v872_v17, %v95_v7  ;;  %148 = vadd.xlane.f32.xlu1 %v147_v5  ;;  %169 = vadd.xlane.f32.xlu0 %v168_v12  ;;  %v79_v13 = vpop.xlane.xlu0 %78  ;;  %v171_v15 = vsel %vm40_vm0, %v133_v9, 0.0 }
  0xa5   :  { %v82_v14 = vpop.xlane.xlu1 %81  ;;  %v102_v18 = vmul.f32 0.03125, %v79_v13  ;;  %v126_v22 = vmul.f32 %v961_v10, %v961_v10 }
  0xa6   :  { %v103_v19 = vmul.f32 0.03125, %v82_v14  ;;  %v127_v16 = vmul.f32 %v964_v11, %v964_v11 }
  0xa7   :  { %v973_v23 = vsub.f32 %v881_v20, %v102_v18  ;;  %v150_v26 = vsel %vm40_vm0, %v126_v22, 0.0 }
  0xa8   :  { %v976_v17 = vsub.f32 %v886_v21, %v103_v19  ;;  %172 = vadd.xlane.f32.xlu1 %v171_v15  ;;  %151 = vadd.xlane.f32.xlu0 %v150_v26  ;;  %v61_v27 = vpop.xlane.xlu0 %60  ;;  %v153_v31 = vsel %vm40_vm0, %v127_v16, 0.0 }
  0xa9   :  { %v64_v30 = vpop.xlane.xlu1 %63  ;;  %v96_v32 = vmul.f32 0.03125, %v61_v27  ;;  %v134_v34 = vmul.f32 %v973_v23, %v973_v23 }
  0xaa   :  { %v97_v33 = vmul.f32 0.03125, %v64_v30  ;;  %v135_v20 = vmul.f32 %v976_v17, %v976_v17 }
  0xab   :  { %v985_v35 = vsub.f32 %v895_v24, %v96_v32  ;;  %v174_v38 = vsel %vm40_vm0, %v134_v34, 0.0 }
  0xac   :  { %v988_v21 = vsub.f32 %v900_v25, %v97_v33  ;;  %154 = vadd.xlane.f32.xlu1 %v153_v31  ;;  %175 = vadd.xlane.f32.xlu0 %v174_v38  ;;  %v85_v39 = vpop.xlane.xlu0 %84  ;;  %v177_v41 = vsel %vm40_vm0, %v135_v20, 0.0  ;;  %v1020_v31 = vld [vmem:[%s1334_s3] ss:$0 sm:$0xff] }
  0xad   :  { %v88_v40 = vpop.xlane.xlu1 %87  ;;  %v104_v42 = vmul.f32 0.03125, %v85_v39  ;;  %v128_v46 = vmul.f32 %v985_v35, %v985_v35 }
  0xae   :  { %v105_v43 = vmul.f32 0.03125, %v88_v40  ;;  %v129_v24 = vmul.f32 %v988_v21, %v988_v21 }
  0xaf   :  { %v997_v47 = vsub.f32 %v909_v28, %v104_v42  ;;  %v156_v48 = vsel %vm40_vm0, %v128_v46, 0.0 }
  0xb0   :  { %v1000_v25 = vsub.f32 %v914_v29, %v105_v43  ;;  %178 = vadd.xlane.f32.xlu1 %v177_v41  ;;  %157 = vadd.xlane.f32.xlu0 %v156_v48  ;;  %v159_v49 = vsel %vm40_vm0, %v129_v24, 0.0  ;;  %v750_v29 = vld [vmem:[%s1333_s1] sm:$0xff]  }
  0xb1   :  { %v136_v50 = vmul.f32 %v997_v47, %v997_v47  ;;  %724 = vmatprep.subr.bf16.mxu0 %v750_v29  ;;  %744 = vmatprep.subr.bf16.mxu1 %v750_v29  ;;  %v1027_v43 = vld [vmem:[%s1335_s4] ss:$0 sm:$0xff] }
  0xb2   :  { %v137_v51 = vmul.f32 %v1000_v25, %v1000_v25  ;;  %725 = vmatpush3.bf16.msra.mxu0 %v750_v29  ;;  %746 = vmatpush3.bf16.msra.mxu1 %v750_v29 }
  0xb3   :  { %v180_v52 = vsel %vm40_vm0, %v136_v50, 0.0  ;;  %726 = vmatprep.subr.bf16.mxu0 %v751_v53  ;;  %745 = vmatprep.subr.bf16.mxu1 %v751_v53 }
  0xb4   :  { %160 = vadd.xlane.f32.xlu1 %v159_v49  ;;  %181 = vadd.xlane.f32.xlu0 %v180_v52  ;;  %v183_v28 = vsel %vm40_vm0, %v137_v51, 0.0 }
  0xb6   :  { %727 = vmatpush3.bf16.msra.mxu0 %v751_v53  ;;  %747 = vmatpush3.bf16.msra.mxu1 %v751_v53 }
  0xb8   :  { %184 = vadd.xlane.f32.xlu1 %v183_v28 }
 0x125   :  { %v140_v56 = vpop.xlane.xlu0 %139 }
 0x126   :  { %v186_v57 = vmul.f32 0.03125, %v140_v56 }
 0x128   :  { %v202_v58 = vadd.f32 1e-05, %v186_v57 }
 0x129   :  { %v143_v59 = vpop.xlane.xlu1 %142  ;;  %v164_v60 = vpop.xlane.xlu0 %163 }
 0x12a   :  { %752 = vrsqrt.f32 %v202_v58  ;;  %v187_v61 = vmul.f32 0.03125, %v143_v59  ;;  %v194_v62 = vmul.f32 0.03125, %v164_v60 }
 0x12c   :  { %v203_v63 = vadd.f32 1e-05, %v187_v61  ;;  %v210_v2 = vadd.f32 1e-05, %v194_v62 }
 0x12d   :  { %v167_v3 = vpop.xlane.xlu1 %166  ;;  %v146_v4 = vpop.xlane.xlu0 %145 }
 0x12e   :  { %754 = vrsqrt.f32 %v203_v63  ;;  %v195_v5 = vmul.f32 0.03125, %v167_v3  ;;  %v188_v6 = vmul.f32 0.03125, %v146_v4 }
 0x12f   :  { %756 = vrsqrt.f32 %v210_v2 }
 0x130   :  { %v211_v7 = vadd.f32 1e-05, %v195_v5  ;;  %v204_v8 = vadd.f32 1e-05, %v188_v6 }
 0x131   :  { %v149_v9 = vpop.xlane.xlu1 %148  ;;  %v170_v12 = vpop.xlane.xlu0 %169 }
 0x132   :  { %758 = vrsqrt.f32 %v211_v7  ;;  %v189_v13 = vmul.f32 0.03125, %v149_v9  ;;  %v196_v14 = vmul.f32 0.03125, %v170_v12 }
 0x133   :  { %760 = vrsqrt.f32 %v204_v8 }
 0x134   :  { %v753_v15 = vpop.eup %752  ;;  %v205_v18 = vadd.f32 1e-05, %v189_v13  ;;  %v212_v19 = vadd.f32 1e-05, %v196_v14 }
 0x135   :  { %v173_v22 = vpop.xlane.xlu1 %172  ;;  %v152_v16 = vpop.xlane.xlu0 %151  ;;  %v234_v26 = vmul.f32 %v753_v15, %v920_v36 }
 0x136   :  { %762 = vrsqrt.f32 %v205_v18  ;;  %v197_v27 = vmul.f32 0.03125, %v173_v22  ;;  %v190_v30 = vmul.f32 0.03125, %v152_v16 }
 0x137   :  { %764 = vrsqrt.f32 %v212_v19  ;;  %v257_v41 = vmul.f32 %v1020_v31, %v234_v26 }
 0x138   :  { %v755_v32 = vpop.eup %754  ;;  %v213_v33 = vadd.f32 1e-05, %v197_v27  ;;  %v206_v34 = vadd.f32 1e-05, %v190_v30 }
 0x139   :  { %v757_v20 = vpop.eup %756  ;;  %v155_v38 = vpop.xlane.xlu1 %154  ;;  %v235_v40 = vmul.f32 %v755_v32, %v928_v44  ;;  %v280_v28 = vadd.f32 %v1027_v43, %v257_v41 }
 0x13a   :  { %v176_v39 = vpop.xlane.xlu0 %175  ;;  %766 = vrsqrt.f32 %v213_v33  ;;  %v191_v36 = vmul.f32 0.03125, %v155_v38  ;;  %v242_v46 = vmul.f32 %v757_v20, %v922_v37 }
 0x13b   :  { %v198_v42 = vmul.f32 0.03125, %v176_v39  ;;  %768 = vrsqrt.f32 %v206_v34  ;;  %v258_v24 = vmul.f32 %v1020_v31, %v235_v40 }
 0x13c   :  { %v759_v48 = vpop.eup %758  ;;  %v207_v49 = vadd.f32 1e-05, %v191_v36  ;;  %v265_v56 = vmul.f32 %v1020_v31, %v242_v46 }
 0x13d   :  { %v214_v50 = vadd.f32 1e-05, %v198_v42  ;;  %v761_v51 = vpop.eup %760  ;;  %v179_v44 = vpop.xlane.xlu1 %178  ;;  %v281_v29 = vadd.f32 %v1027_v43, %v258_v24  ;;  %v243_v53 = vmul.f32 %v759_v48, %v930_v45 }
 0x13e   :  { %v158_v52 = vpop.xlane.xlu0 %157  ;;  %v236_v57 = vmul.f32 %v761_v51, %v938_v54  ;;  %770 = vrsqrt.f32 %v207_v49  ;;  %v199_v37 = vmul.f32 0.03125, %v179_v44  ;;  %v288_v5 = vadd.f32 %v1027_v43, %v265_v56 }
 0x13f   :  { %v192_v58 = vmul.f32 0.03125, %v158_v52  ;;  %772 = vrsqrt.f32 %v214_v50  ;;  %v296_v59 = vpack.c.bf16 %v281_v29, %v280_v28  ;;  %v266_v60 = vmul.f32 %v1020_v31, %v243_v53 }
 0x140   :  { %v763_v61 = vpop.eup %762  ;;  %v215_v62 = vadd.f32 1e-05, %v199_v37  ;;  %v259_v6 = vmul.f32 %v1020_v31, %v236_v57 }
 0x141   :  { %v208_v63 = vadd.f32 1e-05, %v192_v58  ;;  %v765_v2 = vpop.eup %764  ;;  %v237_v3 = vmul.f32 %v763_v61, %v940_v55  ;;  %v161_v4 = vpop.xlane.xlu1 %160  ;;  %728 = vmatprep.mubr.msk.bf16.mxu0 %vm40_vm0, %v296_v59  ;;  %v289_v54 = vadd.f32 %v1027_v43, %v266_v60 }
 0x142   :  { %v182_v45 = vpop.xlane.xlu0 %181  ;;  %v244_v7 = vmul.f32 %v765_v2, %v949_v0  ;;  %774 = vrsqrt.f32 %v215_v62  ;;  %v193_v8 = vmul.f32 0.03125, %v161_v4  ;;  %v282_v16 = vadd.f32 %v1027_v43, %v259_v6 }
 0x143   :  { %v200_v9 = vmul.f32 0.03125, %v182_v45  ;;  %776 = vrsqrt.f32 %v208_v63  ;;  %v300_v12 = vpack.c.bf16 %v289_v54, %v288_v5  ;;  %v260_v13 = vmul.f32 %v1020_v31, %v237_v3 }
 0x144   :  { %v767_v55 = vpop.eup %766  ;;  %v209_v14 = vadd.f32 1e-05, %v193_v8  ;;  %v267_v26 = vmul.f32 %v1020_v31, %v244_v7 }
 0x145   :  { %v216_v15 = vadd.f32 1e-05, %v200_v9  ;;  %v769_v18 = vpop.eup %768  ;;  %v245_v19 = vmul.f32 %v767_v55, %v952_v1  ;;  %v185_v22 = vpop.xlane.xlu1 %184  ;;  %736 = vmatprep.mubr.msk.bf16.mxu1 %vm40_vm0, %v300_v12  ;;  %v283_v0 = vadd.f32 %v1027_v43, %v260_v13 }
 0x146   :  { %v238_v27 = vmul.f32 %v769_v18, %v961_v10  ;;  %778 = vrsqrt.f32 %v209_v14  ;;  %v201_v30 = vmul.f32 0.03125, %v185_v22  ;;  %v290_v39 = vadd.f32 %v1027_v43, %v267_v26 }
 0x147   :  { %780 = vrsqrt.f32 %v216_v15  ;;  %v297_v32 = vpack.c.bf16 %v283_v0, %v282_v16  ;;  %v268_v33 = vmul.f32 %v1020_v31, %v245_v19 }
 0x148   :  { %v771_v34 = vpop.eup %770  ;;  %v217_v20 = vadd.f32 1e-05, %v201_v30  ;;  %v261_v41 = vmul.f32 %v1020_v31, %v238_v27 }
 0x149   :  { %v773_v1 = vpop.eup %772  ;;  %v239_v38 = vmul.f32 %v771_v34, %v964_v11  ;;  %729 = vmatmul.mubr.msk.bf16.vlgmr.msra.gmra.mrb[0].mxu0 %vm40_vm0, %v297_v32  ;;  %v291_v40 = vadd.f32 %v1027_v43, %v268_v33 }
 0x14a   :  { %v246_v10 = vmul.f32 %v773_v1, %v973_v23  ;;  %782 = vrsqrt.f32 %v217_v20  ;;  %v284_v11 = vadd.f32 %v1027_v43, %v261_v41 }
 0x14b   :  { %v301_v36 = vpack.c.bf16 %v291_v40, %v290_v39  ;;  %v262_v42 = vmul.f32 %v1020_v31, %v239_v38 }
 0x14c   :  { %v775_v46 = vpop.eup %774  ;;  %v269_v50 = vmul.f32 %v1020_v31, %v246_v10 }
 0x14d   :  { %v777_v24 = vpop.eup %776  ;;  %v247_v48 = vmul.f32 %v775_v46, %v976_v17  ;;  %737 = vmatmul.mubr.msk.bf16.vlgmr.msra.gmra.mrb[0].mxu1 %vm40_vm0, %v301_v36  ;;  %v285_v49 = vadd.f32 %v1027_v43, %v262_v42 }
 0x14e   :  { %v240_v51 = vmul.f32 %v777_v24, %v985_v35  ;;  %v292_v17 = vadd.f32 %v1027_v43, %v269_v50 }
 0x14f   :  { %v298_v44 = vpack.c.bf16 %v285_v49, %v284_v11  ;;  %v270_v23 = vmul.f32 %v1020_v31, %v247_v48 }
 0x150   :  { %v779_v52 = vpop.eup %778  ;;  %v263_v56 = vmul.f32 %v1020_v31, %v240_v51 }
 0x151   :  { %v781_v28 = vpop.eup %780  ;;  %v241_v29 = vmul.f32 %v779_v52, %v988_v21  ;;  %732 = vmatprep.mubr.msk.bf16.mxu0 %vm40_vm0, %v298_v44  ;;  %v293_v53 = vadd.f32 %v1027_v43, %v270_v23 }
 0x152   :  { %v248_v57 = vmul.f32 %v781_v28, %v997_v47  ;;  %v286_v21 = vadd.f32 %v1027_v43, %v263_v56 }
 0x153   :  { %v302_v37 = vpack.c.bf16 %v293_v53, %v292_v17  ;;  %v264_v35 = vmul.f32 %v1020_v31, %v241_v29 }
 0x154   :  { %v783_v58 = vpop.eup %782  ;;  %v271_v61 = vmul.f32 %v1020_v31, %v248_v57 }
 0x155   :  { %v249_v59 = vmul.f32 %v783_v58, %v1000_v25  ;;  %740 = vmatprep.mubr.msk.bf16.mxu1 %vm40_vm0, %v302_v37  ;;  %v287_v60 = vadd.f32 %v1027_v43, %v264_v35  ;;  %v1085_v25 = vld [vmem:[%s1336_s2] ss:$0 sm:$0xff] }
 0x156   :  { %v294_v47 = vadd.f32 %v1027_v43, %v271_v61 }
 0x157   :  { %v299_v62 = vpack.c.bf16 %v287_v60, %v286_v21  ;;  %v272_v63 = vmul.f32 %v1020_v31, %v249_v59 }
 0x159   :  { %733 = vmatmul.mubr.msk.bf16.gmra.mrb[4].mxu0 %vm40_vm0, %v299_v62  ;;  %v295_v2 = vadd.f32 %v1027_v43, %v272_v63 }
 0x15b   :  { %v303_v3 = vpack.c.bf16 %v295_v2, %v294_v47 }
 0x15d   :  { %741 = vmatmul.mubr.msk.bf16.gmra.mrb[4].mxu1 %vm40_vm0, %v303_v3 }
 0x21c   :  { %v730_v4 = vpop.f32.mrb[0].mxu0 }
 0x21d   :  { %v394_v45 = vadd.f32 %v730_v4, %v1085_v25  ;;  %v385_v5 = vpop.f32.mrb[1].mxu0 }
 0x21e   :  { %v386_v31 = vadd.f32 %v1085_v25, %v385_v5  ;;  %v731_v54 = vpop.f32.mrb[2].mxu0 }
 0x21f   :  { %v700_v6 = vpack.c.bf16 %v394_v45, %v394_v45  ;;  %v397_v7 = vadd.f32 %v731_v54, %v1085_v25  ;;  %v388_v43 = vpop.f32.mrb[3].mxu0 }
 0x220   :  { %v1090_v8 = vpack.c.bf16 %v386_v31, %v386_v31  ;;  %v389_v9 = vadd.f32 %v1085_v25, %v388_v43  ;;  %v738_v12 = vpop.f32.mrb[0].mxu1 }
 0x221   :  { %515 = vst.msk [vmem:[%s1337_s5 + $0x8] sm:$0xf] %vm512_vm1, %v700_v6  ;;  %v701_v13 = vpack.c.bf16 %v397_v7, %v397_v7  ;;  %v426_v55 = vadd.f32 %v738_v12, %v1085_v25  ;;  %533 = vrot.lane.b32.xlu1 %v700_v6, %s784_s17  ;;  %v417_v14 = vpop.f32.mrb[1].mxu1 }
 0x222   :  { %513 = vst.msk [vmem:[%s1337_s5] sm:$0xf] %vm512_vm1, %v1090_v8  ;;  %v699_v15 = vpack.c.bf16 %v389_v9, %v389_v9  ;;  %v418_v18 = vadd.f32 %v1085_v25, %v417_v14  ;;  %v739_v19 = vpop.f32.mrb[2].mxu1 }
 0x223   :  { %516 = vst.msk [vmem:[%s1337_s5 + $0xc] sm:$0xf] %vm512_vm1, %v701_v13  ;;  %v708_v22 = vpack.c.bf16 %v426_v55, %v426_v55  ;;  %v429_v16 = vadd.f32 %v739_v19, %v1085_v25  ;;  %v420_v0 = vpop.f32.mrb[3].mxu1 }
 0x224   :  { %514 = vst.msk [vmem:[%s1337_s5 + $0x4] sm:$0xf] %vm512_vm1, %v699_v15  ;;  %v706_v26 = vpack.c.bf16 %v418_v18, %v418_v18  ;;  %v421_v27 = vadd.f32 %v1085_v25, %v420_v0 }
 0x225   :  { %523 = vst.msk [vmem:[%s1337_s5 + $0x28] sm:$0xf] %vm512_vm1, %v708_v22  ;;  %v709_v30 = vpack.c.bf16 %v429_v16, %v429_v16  ;;  %535 = vrot.lane.b32.xlu1 %v701_v13, %s784_s17  ;;  %549 = vrot.lane.b32.xlu0 %v708_v22, %s784_s17 }
 0x226   :  { %521 = vst.msk [vmem:[%s1337_s5 + $0x20] sm:$0xf] %vm512_vm1, %v706_v26  ;;  %v707_v32 = vpack.c.bf16 %v421_v27, %v421_v27 }
 0x227   :  { %524 = vst.msk [vmem:[%s1337_s5 + $0x2c] sm:$0xf] %vm512_vm1, %v709_v30 }
 0x228   :  { %522 = vst.msk [vmem:[%s1337_s5 + $0x24] sm:$0xf] %vm512_vm1, %v707_v32 }
 0x229   :  { %597 = vrot.lane.b32.xlu0 %v700_v6, %s785_s9  ;;  %551 = vrot.lane.b32.xlu1 %v709_v30, %s784_s17 }
 0x22c   :  { %v734_v33 = vpop.f32.mrb[4].mxu0 }
 0x22d   :  { %v410_v34 = vadd.f32 %v734_v33, %v1085_v25  ;;  %613 = vrot.lane.b32.xlu0 %v708_v22, %s785_s9  ;;  %599 = vrot.lane.b32.xlu1 %v701_v13, %s785_s9  ;;  %v401_v20 = vpop.f32.mrb[5].mxu0 }
 0x22e   :  { %v402_v1 = vadd.f32 %v1085_v25, %v401_v20  ;;  %v735_v38 = vpop.f32.mrb[6].mxu0 }
 0x22f   :  { %v704_v39 = vpack.c.bf16 %v410_v34, %v410_v34  ;;  %v413_v40 = vadd.f32 %v735_v38, %v1085_v25  ;;  %v404_v41 = vpop.f32.mrb[7].mxu0 }
 0x230   :  { %v702_v10 = vpack.c.bf16 %v402_v1, %v402_v1  ;;  %v405_v36 = vadd.f32 %v1085_v25, %v404_v41  ;;  %v742_v42 = vpop.f32.mrb[4].mxu1 }
 0x231   :  { %519 = vst.msk [vmem:[%s1337_s5 + $0x18] sm:$0xf] %vm512_vm1, %v704_v39  ;;  %v705_v46 = vpack.c.bf16 %v413_v40, %v413_v40  ;;  %v442_v24 = vadd.f32 %v742_v42, %v1085_v25  ;;  %529 = vrot.lane.b32.xlu0 %v1090_v8, %s784_s17  ;;  %615 = vrot.lane.b32.xlu1 %v709_v30, %s785_s9  ;;  %v433_v48 = vpop.f32.mrb[5].mxu1 }
 0x232   :  { %517 = vst.msk [vmem:[%s1337_s5 + $0x10] sm:$0xf] %vm512_vm1, %v702_v10  ;;  %v703_v11 = vpack.c.bf16 %v405_v36, %v405_v36  ;;  %v434_v49 = vadd.f32 %v1085_v25, %v433_v48  ;;  %v743_v50 = vpop.f32.mrb[6].mxu1 }
 0x233   :  { %520 = vst.msk [vmem:[%s1337_s5 + $0x1c] sm:$0xf] %vm512_vm1, %v705_v46  ;;  %v712_v51 = vpack.c.bf16 %v442_v24, %v442_v24  ;;  %v445_v44 = vadd.f32 %v743_v50, %v1085_v25  ;;  %v436_v23 = vpop.f32.mrb[7].mxu1 }
 0x234   :  { %518 = vst.msk [vmem:[%s1337_s5 + $0x14] sm:$0xf] %vm512_vm1, %v703_v11  ;;  %v710_v52 = vpack.c.bf16 %v434_v49, %v434_v49  ;;  %v437_v28 = vadd.f32 %v1085_v25, %v436_v23 }
 0x235   :  { %527 = vst.msk [vmem:[%s1337_s5 + $0x38] sm:$0xf] %vm512_vm1, %v712_v51  ;;  %v713_v29 = vpack.c.bf16 %v445_v44, %v445_v44  ;;  %531 = vrot.lane.b32.xlu1 %v699_v15, %s784_s17  ;;  %545 = vrot.lane.b32.xlu0 %v706_v26, %s784_s17 }
 0x236   :  { %525 = vst.msk [vmem:[%s1337_s5 + $0x30] sm:$0xf] %vm512_vm1, %v710_v52  ;;  %v711_v17 = vpack.c.bf16 %v437_v28, %v437_v28 }
 0x237   :  { %528 = vst.msk [vmem:[%s1337_s5 + $0x3c] sm:$0xf] %vm512_vm1, %v713_v29 }
 0x238   :  { %526 = vst.msk [vmem:[%s1337_s5 + $0x34] sm:$0xf] %vm512_vm1, %v711_v17 }
 0x239   :  { %547 = vrot.lane.b32.xlu1 %v707_v32, %s784_s17  ;;  %593 = vrot.lane.b32.xlu0 %v1090_v8, %s785_s9 }
 0x23d   :  { %595 = vrot.lane.b32.xlu1 %v699_v15, %s785_s9  ;;  %609 = vrot.lane.b32.xlu0 %v706_v26, %s785_s9 }
 0x241   :  { %611 = vrot.lane.b32.xlu1 %v707_v32, %s785_s9  ;;  %541 = vrot.lane.b32.xlu0 %v704_v39, %s784_s17 }
 0x245   :  { %543 = vrot.lane.b32.xlu1 %v705_v46, %s784_s17  ;;  %557 = vrot.lane.b32.xlu0 %v712_v51, %s784_s17 }
 0x249   :  { %605 = vrot.lane.b32.xlu0 %v704_v39, %s785_s9  ;;  %559 = vrot.lane.b32.xlu1 %v713_v29, %s784_s17 }
 0x24d   :  { %537 = vrot.lane.b32.xlu0 %v702_v10, %s784_s17  ;;  %607 = vrot.lane.b32.xlu1 %v705_v46, %s785_s9 }
 0x251   :  { %539 = vrot.lane.b32.xlu1 %v703_v11, %s784_s17  ;;  %553 = vrot.lane.b32.xlu0 %v710_v52, %s784_s17 }
 0x255   :  { %555 = vrot.lane.b32.xlu1 %v711_v17, %s784_s17  ;;  %601 = vrot.lane.b32.xlu0 %v702_v10, %s785_s9 }
 0x259   :  { %603 = vrot.lane.b32.xlu1 %v703_v11, %s785_s9  ;;  %617 = vrot.lane.b32.xlu0 %v710_v52, %s785_s9 }
 0x25d   :  { %619 = vrot.lane.b32.xlu1 %v711_v17, %s785_s9  ;;  %621 = vrot.lane.b32.xlu0 %v712_v51, %s785_s9 }
 0x261   :  { %623 = vrot.lane.b32.xlu1 %v713_v29, %s785_s9 }
 0x293   :  { %v534_v53 = vpop.permute.xlu1 %533 }
 0x294   :  { %579 = vst.msk [vmem:[%s1338_s6 + $0x8] sm:$0xf] %vm512_vm1, %v534_v53 }
 0x297   :  { %v536_v56 = vpop.permute.xlu1 %535  ;;  %v550_v57 = vpop.permute.xlu0 %549 }
 0x298   :  { %580 = vst.msk [vmem:[%s1338_s6 + $0xc] sm:$0xf] %vm512_vm1, %v536_v56  ;;  %587 = vst.msk [vmem:[%s1338_s6 + $0x28] sm:$0xf] %vm512_vm1, %v550_v57 }
 0x29b   :  { %v552_v37 = vpop.permute.xlu1 %551  ;;  %v598_v35 = vpop.permute.xlu0 %597 }
 0x29c   :  { %588 = vst.msk [vmem:[%s1338_s6 + $0x2c] sm:$0xf] %vm512_vm1, %v552_v37  ;;  %643 = vst.msk [vmem:[%s1339_s7 + $0x8] sm:$0xf] %vm512_vm1, %v598_v35 }
 0x29f   :  { %v600_v58 = vpop.permute.xlu1 %599  ;;  %v614_v59 = vpop.permute.xlu0 %613 }
 0x2a0   :  { %644 = vst.msk [vmem:[%s1339_s7 + $0xc] sm:$0xf] %vm512_vm1, %v600_v58  ;;  %651 = vst.msk [vmem:[%s1339_s7 + $0x28] sm:$0xf] %vm512_vm1, %v614_v59 }
 0x2a3   :  { %v616_v21 = vpop.permute.xlu1 %615  ;;  %v530_v60 = vpop.permute.xlu0 %529 }
 0x2a4   :  { %652 = vst.msk [vmem:[%s1339_s7 + $0x2c] sm:$0xf] %vm512_vm1, %v616_v21  ;;  %577 = vst.msk [vmem:[%s1338_s6] sm:$0xf] %vm512_vm1, %v530_v60 }
 0x2a7   :  { %v532_v61 = vpop.permute.xlu1 %531  ;;  %v546_v62 = vpop.permute.xlu0 %545 }
 0x2a8   :  { %578 = vst.msk [vmem:[%s1338_s6 + $0x4] sm:$0xf] %vm512_vm1, %v532_v61  ;;  %585 = vst.msk [vmem:[%s1338_s6 + $0x20] sm:$0xf] %vm512_vm1, %v546_v62 }
 0x2ab   :  { %v548_v63 = vpop.permute.xlu1 %547  ;;  %v594_v47 = vpop.permute.xlu0 %593 }
 0x2ac   :  { %586 = vst.msk [vmem:[%s1338_s6 + $0x24] sm:$0xf] %vm512_vm1, %v548_v63  ;;  %641 = vst.msk [vmem:[%s1339_s7] sm:$0xf] %vm512_vm1, %v594_v47 }
 0x2af   :  { %v596_v2 = vpop.permute.xlu1 %595  ;;  %v610_v3 = vpop.permute.xlu0 %609 }
 0x2b0   :  { %642 = vst.msk [vmem:[%s1339_s7 + $0x4] sm:$0xf] %vm512_vm1, %v596_v2  ;;  %649 = vst.msk [vmem:[%s1339_s7 + $0x20] sm:$0xf] %vm512_vm1, %v610_v3 }
 0x2b3   :  { %v612_v25 = vpop.permute.xlu1 %611  ;;  %v542_v4 = vpop.permute.xlu0 %541 }
 0x2b4   :  { %650 = vst.msk [vmem:[%s1339_s7 + $0x24] sm:$0xf] %vm512_vm1, %v612_v25  ;;  %583 = vst.msk [vmem:[%s1338_s6 + $0x18] sm:$0xf] %vm512_vm1, %v542_v4 }
 0x2b7   :  { %v544_v45 = vpop.permute.xlu1 %543  ;;  %v558_v5 = vpop.permute.xlu0 %557 }
 0x2b8   :  { %584 = vst.msk [vmem:[%s1338_s6 + $0x1c] sm:$0xf] %vm512_vm1, %v544_v45  ;;  %591 = vst.msk [vmem:[%s1338_s6 + $0x38] sm:$0xf] %vm512_vm1, %v558_v5 }
 0x2bb   :  { %v560_v31 = vpop.permute.xlu1 %559  ;;  %v606_v54 = vpop.permute.xlu0 %605 }
 0x2bc   :  { %592 = vst.msk [vmem:[%s1338_s6 + $0x3c] sm:$0xf] %vm512_vm1, %v560_v31  ;;  %647 = vst.msk [vmem:[%s1339_s7 + $0x18] sm:$0xf] %vm512_vm1, %v606_v54 }
 0x2bf   :  { %v608_v6 = vpop.permute.xlu1 %607  ;;  %v538_v7 = vpop.permute.xlu0 %537 }
 0x2c0   :  { %648 = vst.msk [vmem:[%s1339_s7 + $0x1c] sm:$0xf] %vm512_vm1, %v608_v6  ;;  %581 = vst.msk [vmem:[%s1338_s6 + $0x10] sm:$0xf] %vm512_vm1, %v538_v7 }
 0x2c3   :  { %v540_v43 = vpop.permute.xlu1 %539  ;;  %v554_v8 = vpop.permute.xlu0 %553 }
 0x2c4   :  { %582 = vst.msk [vmem:[%s1338_s6 + $0x14] sm:$0xf] %vm512_vm1, %v540_v43  ;;  %589 = vst.msk [vmem:[%s1338_s6 + $0x30] sm:$0xf] %vm512_vm1, %v554_v8 }
 0x2c7   :  { %v556_v9 = vpop.permute.xlu1 %555  ;;  %v602_v12 = vpop.permute.xlu0 %601 }
 0x2c8   :  { %590 = vst.msk [vmem:[%s1338_s6 + $0x34] sm:$0xf] %vm512_vm1, %v556_v9  ;;  %645 = vst.msk [vmem:[%s1339_s7 + $0x10] sm:$0xf] %vm512_vm1, %v602_v12 }
 0x2cb   :  { %v604_v13 = vpop.permute.xlu1 %603  ;;  %v618_v55 = vpop.permute.xlu0 %617 }
 0x2cc   :  { %646 = vst.msk [vmem:[%s1339_s7 + $0x14] sm:$0xf] %vm512_vm1, %v604_v13  ;;  %653 = vst.msk [vmem:[%s1339_s7 + $0x30] sm:$0xf] %vm512_vm1, %v618_v55 }
 0x2cf   :  { %v620_v14 = vpop.permute.xlu1 %619  ;;  %v622_v15 = vpop.permute.xlu0 %621 }
 0x2d0   :  { %654 = vst.msk [vmem:[%s1339_s7 + $0x34] sm:$0xf] %vm512_vm1, %v620_v14  ;;  %655 = vst.msk [vmem:[%s1339_s7 + $0x38] sm:$0xf] %vm512_vm1, %v622_v15 }
 0x2d3   :  { %v624_v18 = vpop.permute.xlu1 %623 }
 0x2d4   :  { %656 = vst.msk [vmem:[%s1339_s7 + $0x3c] sm:$0xf] %vm512_vm1, %v624_v18 }

</bundles_post_ra>
